<compile_context>
chip_gen: v7x
topology: tpu7x:2x2x1
jax: 0.10.0
libtpu: 0.0.40
codegen_flags: <defaults>
</compile_context>

<pallas_src>
import functools
import math

import jax
import jax.numpy as jnp
import numpy as np
from jax.experimental import pallas as pl
from jax.experimental.pallas import tpu as pltpu


# ----------------------------------------------------------------------------- kernel
def _pbma_kernel(q_ref, qbd_ref, x_ref, wkv_ref, wfc_ref, bfc_ref, o_ref,
                 *scratch, n_head, compute_dtype, multi_tile, n_valid):
    """grid = (batch blocks [parallel], sequence blocks [arbitrary/reduction])."""
    BB, TN, D = x_ref.shape
    M = q_ref.shape[0]
    HM = n_head * M
    dh = D // n_head
    ni = pl.program_id(1)
    nn = pl.num_programs(1)
    f32 = jnp.float32

    # ---- fused K|V projection: one (BB*TN, D) @ (D, 2D) GEMM, compute dtype out
    x2 = x_ref[...].reshape(BB * TN, D).astype(compute_dtype)
    kv = jnp.dot(x2, wkv_ref[...], preferred_element_type=compute_dtype)
    k2 = kv[:, :D]                                    # (BB*TN, D)
    v3 = kv[:, D:].reshape(BB, TN, D)                 # (BB, TN, D)

    # ---- logits for ALL heads & seeds via block-diagonal, pre-scaled Q -------
    #   qbd[h*dh + i, h*M + m] = Q[m, h*dh + i] / sqrt(d_qk)
    logits = jnp.dot(k2, qbd_ref[...], preferred_element_type=f32)
    logits = logits.reshape(BB, TN, HM)               # (BB, TN, H*M)

    if n_valid is not None:                            # padded sequence tail
        pos = ni * TN + jax.lax.broadcasted_iota(jnp.int32, (1, TN, 1), 1)
        logits = jnp.where(pos < n_valid, logits, f32(-1e30))

    def attn_out(p):
        # all-head P^T @ V: (BB, TN, HM) x (BB, TN, D) -> (BB, HM, D)
        return jax.lax.dot_general(
            p.astype(compute_dtype), v3,
            dimension_numbers=(((1,), (1,)), ((0,), (0,))),
            preferred_element_type=f32)

    def finalize(acc, l):
        # softmax normalization (exact on the f32 path, EUP approx on bf16 path)
        if compute_dtype == jnp.float32:
            inv_l = 1.0 / l
        else:
            inv_l = pl.reciprocal(l, approx=True)
        accn = acc * inv_l[:, :, None]                # (BB, HM, D)
        # head-diagonal blocks + attention residual (UNSCALED Q)
        q = q_ref[...]                                # (M, D) f32
        blocks = [accn[:, h * M:(h + 1) * M, h * dh:(h + 1) * dh]
                  for h in range(n_head)]
        o_pre = jnp.concatenate(blocks, axis=-1) + q[None]      # (BB, M, D)
        o2 = o_pre.reshape(BB * M, D)
        o_fc = jnp.dot(o2.astype(compute_dtype), wfc_ref[...],
                       preferred_element_type=f32) + bfc_ref[...]
        o = jnp.maximum(o_fc, 0.0) + o2               # ReLU(fc(o)) + residual_2
        o_ref[...] = o.reshape(BB, M, D).astype(o_ref.dtype)

    if multi_tile:
        m_sc, l_sc, acc_sc = scratch                  # (BB,HM), (BB,HM), (BB,HM,D)

        @pl.when(ni == 0)
        def _init():
            m_sc[...] = jnp.full(m_sc.shape, -jnp.inf, m_sc.dtype)
            l_sc[...] = jnp.zeros(l_sc.shape, l_sc.dtype)
            acc_sc[...] = jnp.zeros(acc_sc.shape, acc_sc.dtype)

        m_prev = m_sc[...]                                         # (BB, HM)
        m_new = jnp.maximum(m_prev, jnp.max(logits, axis=1))
        alpha = jnp.exp(m_prev - m_new)
        p = jnp.exp(logits - m_new[:, None, :])                    # (BB, TN, HM)
        l_sc[...] = alpha * l_sc[...] + jnp.sum(p, axis=1)
        acc_sc[...] = alpha[:, :, None] * acc_sc[...] + attn_out(p)
        m_sc[...] = m_new

        @pl.when(ni == nn - 1)
        def _done():
            finalize(acc_sc[...], l_sc[...])
    else:
        # single sequence tile: plain softmax, no online-softmax bookkeeping
        m = jnp.max(logits, axis=1)                                # (BB, HM)
        p = jnp.exp(logits - m[:, None, :])
        finalize(attn_out(p), jnp.sum(p, axis=1))


# ----------------------------------------------------------------------------- tiling helpers
def _chip_info():
    """Coarse chip classification (TensorCores per chip, VMEM MiB)."""
    try:
        kind = jax.devices()[0].device_kind.lower()
    except Exception:
        kind = ""
    if "v7" in kind or "7x" in kind:
        return {"two_tc": True, "vmem_mib": 64}
    if "v4" in kind or "v5p" in kind:
        return {"two_tc": True, "vmem_mib": 128}
    if "v5" in kind or "v6" in kind:          # v5e / v6e: single TensorCore
        return {"two_tc": False, "vmem_mib": 128}
    return {"two_tc": False, "vmem_mib": 64}  # conservative default


def _pick_batch_tile(B, cap, two_tc):
    """Largest divisor of B <= cap.  Only on multi-TC chips do we force >= 2
    parallel grid steps (single-TC chips would just lose GEMM rows)."""
    cap = max(1, min(cap, B))
    if two_tc and B > 1:
        cap = min(cap, max(1, B // 2))
    best = 1
    for d in range(1, cap + 1):
        if B % d == 0:
            best = d
    return best


def _estimate_step_vmem(BB, TN, D, HM, M, x_bytes, cd_bytes, out_bytes):
    tile = BB * TN
    b = 2 * tile * D * x_bytes                     # X tile (double-buffered)
    b += tile * D * cd_bytes                       # in-kernel X cast
    b += tile * 2 * D * cd_bytes                   # K|V projection result
    b += tile * HM * (4 + cd_bytes)                # logits (f32) + p (compute dtype)
    b += BB * HM * D * 4                           # pv / acc accumulator (f32)
    b += 2 * (3 * D * D + D * HM) * cd_bytes       # Wkv + Wfc + Qbd (double-buffered)
    b += 2 * (M * D + D) * 4                       # Q + bias (f32)
    b += 2 * BB * M * D * out_bytes                # output block (double-buffered)
    b += 2 * BB * HM * 4                           # m / l stats
    return b


# ----------------------------------------------------------------------------- wrapper
def pooling_by_multihead_attention(X, S, Wq, Wk, Wv, Wfc, bfc, *, n_head,
                                   batch_block=8, n_block=None,
                                   compute_dtype=jnp.bfloat16):
    """X: (B, N, D). S: (M, D). Wq/Wk/Wv/Wfc: (D, D) torch-style (out, in).
    bfc: (D,). Returns (B, M, D) in X.dtype."""
    X = jnp.asarray(X)
    B, N, D = X.shape
    M = S.shape[0]
    assert D % n_head == 0, (D, n_head)
    dh = D // n_head
    HM = n_head * M
    scale = 1.0 / math.sqrt(dh)                    # temperature = sqrt(d_qk)
    f32 = jnp.float32

    info = _chip_info()
    vmem_limit = min(int(info["vmem_mib"] * 0.75), 96) * 1024 * 1024

    # ---- batch-invariant precompute (hoisted out of the kernel) --------------
    Q = jnp.dot(jnp.asarray(S, f32), jnp.asarray(Wq, f32).T)       # (M, D), unscaled
    # block-diagonal, softmax-scaled Q: (D, H*M); head h occupies block (h, h)
    Qh = (Q * scale).reshape(M, n_head, dh).transpose(1, 2, 0)     # (H, dh, M)
    eye = jnp.eye(n_head, dtype=f32)
    Qbd = (Qh[:, :, None, :] * eye[:, None, :, None]).reshape(D, HM)
    Qbd = Qbd.astype(compute_dtype)
    # fused K|V projection weight: (D, 2D)
    Wkv = jnp.concatenate([jnp.asarray(Wk, f32).T, jnp.asarray(Wv, f32).T],
                          axis=1).astype(compute_dtype)
    WfcT = jnp.asarray(Wfc, f32).T.astype(compute_dtype)
    bfc2 = jnp.asarray(bfc, f32).reshape(1, D)

    # ---- tile selection -------------------------------------------------------
    x_bytes = X.dtype.itemsize
    cd_bytes = jnp.dtype(compute_dtype).itemsize
    out_bytes = X.dtype.itemsize
    BB = _pick_batch_tile(B, batch_block, info["two_tc"])

    if n_block is None:
        n_block = 1024 if info["vmem_mib"] >= 128 else 256
    n_block = max(8, (n_block // 8) * 8)
    budget = int(0.7 * vmem_limit)
    cands = sorted({c for c in (n_block, 1024, 512, 256, 128, 64, 32, 16, 8)
                    if 8 <= c <= n_block}, reverse=True)
    TN = cands[-1]
    for c in cands:
        if _estimate_step_vmem(BB, c, D, HM, M, x_bytes, cd_bytes, out_bytes) <= budget:
            TN = c
            break

    if N <= TN:
        TN, Npad = N, N
    else:
        Npad = (-(-N // TN)) * TN
    n_valid = N if Npad != N else None
    if Npad != N:
        X = jnp.pad(X, ((0, 0), (0, Npad - N), (0, 0)))
    nb, nn = B // BB, Npad // TN
    multi_tile = nn > 1

    kernel = functools.partial(_pbma_kernel, n_head=n_head,
                               compute_dtype=compute_dtype,
                               multi_tile=multi_tile, n_valid=n_valid)

    scratch = []
    if multi_tile:
        scratch = [pltpu.VMEM((BB, HM), jnp.float32),       # running max
                   pltpu.VMEM((BB, HM), jnp.float32),       # running denominator
                   pltpu.VMEM((BB, HM, D), jnp.float32)]    # running attn @ V

    return pl.pallas_call(
        kernel,
        out_shape=jax.ShapeDtypeStruct((B, M, D), X.dtype),
        grid_spec=pltpu.PrefetchScalarGridSpec(
            num_scalar_prefetch=0,
            grid=(nb, nn),
            in_specs=[
                pl.BlockSpec((M, D), lambda bi, ni: (0, 0)),             # Q (f32)
                pl.BlockSpec((D, HM), lambda bi, ni: (0, 0)),            # block-diag Q
                pl.BlockSpec((BB, TN, D), lambda bi, ni: (bi, ni, 0)),   # X tile
                pl.BlockSpec((D, 2 * D), lambda bi, ni: (0, 0)),         # Wk|Wv fused
                pl.BlockSpec((D, D), lambda bi, ni: (0, 0)),             # Wfc
                pl.BlockSpec((1, D), lambda bi, ni: (0, 0)),             # b_fc
            ],
            out_specs=pl.BlockSpec((BB, M, D), lambda bi, ni: (bi, 0, 0)),
            scratch_shapes=scratch,
        ),
        compiler_params=pltpu.CompilerParams(
            dimension_semantics=("parallel", "arbitrary"),
            vmem_limit_bytes=vmem_limit),
    )(Q, Qbd, X, Wkv, WfcT, bfc2)


# ----------------------------------------------------------------------------- pure-JAX reference
def reference(X, S, Wq, Wk, Wv, Wfc, bfc, *, n_head):
    """Mirrors the PyTorch forward (default PMA config)."""
    B, N, D = X.shape
    M = S.shape[0]
    d_qk = D // n_head
    q = S @ Wq.T                                   # (M, D), same across batch
    k = X @ Wk.T                                   # (B, N, D)
    v = X @ Wv.T
    qh = q.reshape(M, n_head, d_qk).transpose(1, 0, 2)             # (H, M, d)
    kh = k.reshape(B, N, n_head, d_qk).transpose(0, 2, 1, 3)       # (B, H, N, d)
    vh = v.reshape(B, N, n_head, d_qk).transpose(0, 2, 1, 3)
    logits = jnp.einsum('hmd,bhnd->bhmn', qh / math.sqrt(d_qk), kh)
    attn = jax.nn.softmax(logits, axis=-1)
    oh = jnp.einsum('bhmn,bhnd->bhmd', attn, vh) + qh[None]        # attn_residual
    o_pre = oh.transpose(0, 2, 1, 3).reshape(B, M, D)
    return jax.nn.relu(o_pre @ Wfc.T + bfc) + o_pre


# ----------------------------------------------------------------------------- test
if __name__ == "__main__":
    B, N, d_model, n_head, num_seeds = 4, 16, 32, 4, 4

    key = jax.random.PRNGKey(0)
    ks = jax.random.split(key, 8)
    X = jax.random.normal(ks[0], (B, N, d_model), jnp.float32)
    S = jax.random.normal(ks[1], (num_seeds, d_model), jnp.float32) * 0.1
    w_scale = 1.0 / math.sqrt(d_model)
    Wq = jax.random.normal(ks[2], (d_model, d_model), jnp.float32) * w_scale
    Wk = jax.random.normal(ks[3], (d_model, d_model), jnp.float32) * w_scale
    Wv = jax.random.normal(ks[4], (d_model, d_model), jnp.float32) * w_scale
    Wfc = jax.random.normal(ks[5], (d_model, d_model), jnp.float32) * w_scale
    bfc = jax.random.normal(ks[6], (d_model,), jnp.float32) * 0.01

    ref = jax.block_until_ready(
        reference(X, S, Wq, Wk, Wv, Wfc, bfc, n_head=n_head))

    # 1) f32 compute, single-tile fast path (N <= TN): no online softmax.
    out_single = jax.block_until_ready(
        pooling_by_multihead_attention(X, S, Wq, Wk, Wv, Wfc, bfc, n_head=n_head,
                                       compute_dtype=jnp.float32))
    assert out_single.shape == (B, num_seeds, d_model), out_single.shape
    np.testing.assert_allclose(np.asarray(out_single), np.asarray(ref),
                               rtol=2e-3, atol=2e-3)

    # 2) f32 compute, multi-tile path (n_block=8 -> 2 sequence tiles, online softmax).
    out_multi = jax.block_until_ready(
        pooling_by_multihead_attention(X, S, Wq, Wk, Wv, Wfc, bfc, n_head=n_head,
                                       n_block=8, compute_dtype=jnp.float32))
    np.testing.assert_allclose(np.asarray(out_multi), np.asarray(ref),
                               rtol=2e-3, atol=2e-3)

    # 3) f32 compute, ragged N (padding + logits masking path).
    N2 = 20
    X2 = jax.random.normal(ks[7], (B, N2, d_model), jnp.float32)
    ref2 = jax.block_until_ready(
        reference(X2, S, Wq, Wk, Wv, Wfc, bfc, n_head=n_head))
    out_ragged = jax.block_until_ready(
        pooling_by_multihead_attention(X2, S, Wq, Wk, Wv, Wfc, bfc, n_head=n_head,
                                       n_block=8, compute_dtype=jnp.float32))
    np.testing.assert_allclose(np.asarray(out_ragged), np.asarray(ref2),
                               rtol=2e-3, atol=2e-3)

    # 4) bf16 MXU fast path (f32 accumulation): looser tolerance.
    out_bf16 = jax.block_until_ready(
        pooling_by_multihead_attention(X, S, Wq, Wk, Wv, Wfc, bfc, n_head=n_head,
                                       n_block=8, compute_dtype=jnp.bfloat16))
    np.testing.assert_allclose(np.asarray(out_bf16), np.asarray(ref),
                               rtol=3e-2, atol=3e-2)

    print("KERNEL_OK")
</pallas_src>

<mosaic_0001>
module attributes {stable_mosaic.version = 11 : i64} {
  func.func @_pbma_kernel(%arg0: i32, %arg1: i32, %arg2: memref<4x32xf32, #tpu.memory_space<vmem>>, %arg3: memref<32x16xf32, #tpu.memory_space<vmem>>, %arg4: memref<4x16x32xf32, #tpu.memory_space<vmem>>, %arg5: memref<32x64xf32, #tpu.memory_space<vmem>>, %arg6: memref<32x32xf32, #tpu.memory_space<vmem>>, %arg7: memref<1x32xf32, #tpu.memory_space<vmem>>, %arg8: memref<4x4x32xf32, #tpu.memory_space<vmem>>) attributes {dimension_semantics = [#tpu.dimension_semantics<parallel>, #tpu.dimension_semantics<arbitrary>], iteration_bounds = array<i64: 1, 1>, scalar_prefetch = 0 : i64, scratch_operands = 0 : i64, tpu.core_type = #tpu.core_type<tc>, window_params = [{pipeline_mode = #tpu.pipeline_mode<synchronous>, transform_indices = @transform_0, window_bounds = array<i64: 4, 32>}, {pipeline_mode = #tpu.pipeline_mode<synchronous>, transform_indices = @transform_1, window_bounds = array<i64: 32, 16>}, {transform_indices = @transform_2, window_bounds = array<i64: 4, 16, 32>}, {pipeline_mode = #tpu.pipeline_mode<synchronous>, transform_indices = @transform_3, window_bounds = array<i64: 32, 64>}, {pipeline_mode = #tpu.pipeline_mode<synchronous>, transform_indices = @transform_4, window_bounds = array<i64: 32, 32>}, {pipeline_mode = #tpu.pipeline_mode<synchronous>, transform_indices = @transform_5, window_bounds = array<i64: 1, 32>}, {transform_indices = @transform_6, window_bounds = array<i64: 4, 4, 32>}]} {
    %c0 = arith.constant 0 : index
    %c0_0 = arith.constant 0 : index
    %c0_1 = arith.constant 0 : index
    %0 = vector.load %arg4[%c0, %c0_0, %c0_1] : memref<4x16x32xf32, #tpu.memory_space<vmem>>, vector<4x16x32xf32>
    %1 = vector.shape_cast %0 : vector<4x16x32xf32> to vector<64x32xf32>
    %c0_2 = arith.constant 0 : index
    %c0_3 = arith.constant 0 : index
    %2 = vector.load %arg5[%c0_2, %c0_3] : memref<32x64xf32, #tpu.memory_space<vmem>>, vector<32x64xf32>
    %cst = arith.constant dense<0.000000e+00> : vector<64x64xf32>
    %3 = tpu.matmul %1, %2, %cst {dimension_numbers = #tpu.dot_dimension_numbers<[1], [0], [0], [1], [0, 0, 1, 1], [], []>} : vector<64x32xf32>, vector<32x64xf32>, vector<64x64xf32> -> vector<64x64xf32>
    %4 = vector.extract_strided_slice %3 {offsets = [0, 0], sizes = [64, 32], strides = [1, 1]} : vector<64x64xf32> to vector<64x32xf32>
    %5 = vector.extract_strided_slice %3 {offsets = [0, 32], sizes = [64, 32], strides = [1, 1]} : vector<64x64xf32> to vector<64x32xf32>
    %6 = vector.shape_cast %5 : vector<64x32xf32> to vector<4x16x32xf32>
    %c0_4 = arith.constant 0 : index
    %c0_5 = arith.constant 0 : index
    %7 = vector.load %arg3[%c0_4, %c0_5] : memref<32x16xf32, #tpu.memory_space<vmem>>, vector<32x16xf32>
    %cst_6 = arith.constant dense<0.000000e+00> : vector<64x16xf32>
    %8 = tpu.matmul %4, %7, %cst_6 {dimension_numbers = #tpu.dot_dimension_numbers<[1], [0], [0], [1], [0, 0, 1, 1], [], []>} : vector<64x32xf32>, vector<32x16xf32>, vector<64x16xf32> -> vector<64x16xf32>
    %9 = vector.shape_cast %8 : vector<64x16xf32> to vector<4x16x16xf32>
    %cst_7 = arith.constant dense<0xFF800000> : vector<4x16xf32>
    %10 = vector.multi_reduction <maximumf>, %9, %cst_7 [1] : vector<4x16x16xf32> to vector<4x16xf32>
    %11 = vector.shape_cast %10 : vector<4x16xf32> to vector<4x1x16xf32>
    %12 = vector.broadcast %11 : vector<4x1x16xf32> to vector<4x16x16xf32>
    %13 = arith.subf %9, %12 : vector<4x16x16xf32>
    %14 = math.exp %13 : vector<4x16x16xf32>
    %cst_8 = arith.constant dense<0.000000e+00> : vector<4x16x32xf32>
    %15 = tpu.matmul %14, %6, %cst_8 {dimension_numbers = #tpu.dot_dimension_numbers<[1], [1], [2], [2], [0, 0, 0, 2, 1, 2], [0], [0]>} : vector<4x16x16xf32>, vector<4x16x32xf32>, vector<4x16x32xf32> -> vector<4x16x32xf32>
    %cst_9 = arith.constant dense<0.000000e+00> : vector<4x16xf32>
    %16 = vector.multi_reduction <add>, %14, %cst_9 [1] : vector<4x16x16xf32> to vector<4x16xf32>
    %cst_10 = arith.constant 1.000000e+00 : f32
    %17 = vector.broadcast %cst_10 : f32 to vector<4x16xf32>
    %18 = arith.divf %17, %16 : vector<4x16xf32>
    %19 = vector.shape_cast %18 : vector<4x16xf32> to vector<4x16x1xf32>
    %20 = vector.broadcast %19 : vector<4x16x1xf32> to vector<4x16x32xf32>
    %21 = arith.mulf %15, %20 : vector<4x16x32xf32>
    %c0_11 = arith.constant 0 : index
    %c0_12 = arith.constant 0 : index
    %22 = vector.load %arg2[%c0_11, %c0_12] : memref<4x32xf32, #tpu.memory_space<vmem>>, vector<4x32xf32>
    %23 = vector.extract_strided_slice %21 {offsets = [0, 0, 0], sizes = [4, 4, 8], strides = [1, 1, 1]} : vector<4x16x32xf32> to vector<4x4x8xf32>
    %24 = vector.extract_strided_slice %21 {offsets = [0, 4, 8], sizes = [4, 4, 8], strides = [1, 1, 1]} : vector<4x16x32xf32> to vector<4x4x8xf32>
    %25 = vector.extract_strided_slice %21 {offsets = [0, 8, 16], sizes = [4, 4, 8], strides = [1, 1, 1]} : vector<4x16x32xf32> to vector<4x4x8xf32>
    %26 = vector.extract_strided_slice %21 {offsets = [0, 12, 24], sizes = [4, 4, 8], strides = [1, 1, 1]} : vector<4x16x32xf32> to vector<4x4x8xf32>
    %27 = tpu.concatenate %23, %24, %25, %26 in 2 : vector<4x4x8xf32>, vector<4x4x8xf32>, vector<4x4x8xf32>, vector<4x4x8xf32> -> vector<4x4x32xf32>
    %28 = vector.shape_cast %22 : vector<4x32xf32> to vector<1x4x32xf32>
    %29 = vector.broadcast %28 : vector<1x4x32xf32> to vector<4x4x32xf32>
    %30 = arith.addf %27, %29 : vector<4x4x32xf32>
    %31 = vector.shape_cast %30 : vector<4x4x32xf32> to vector<16x32xf32>
    %c0_13 = arith.constant 0 : index
    %c0_14 = arith.constant 0 : index
    %32 = vector.load %arg6[%c0_13, %c0_14] : memref<32x32xf32, #tpu.memory_space<vmem>>, vector<32x32xf32>
    %cst_15 = arith.constant dense<0.000000e+00> : vector<16x32xf32>
    %33 = tpu.matmul %31, %32, %cst_15 {dimension_numbers = #tpu.dot_dimension_numbers<[1], [0], [0], [1], [0, 0, 1, 1], [], []>} : vector<16x32xf32>, vector<32x32xf32>, vector<16x32xf32> -> vector<16x32xf32>
    %c0_16 = arith.constant 0 : index
    %c0_17 = arith.constant 0 : index
    %34 = vector.load %arg7[%c0_16, %c0_17] : memref<1x32xf32, #tpu.memory_space<vmem>>, vector<1x32xf32>
    %35 = vector.broadcast %34 : vector<1x32xf32> to vector<16x32xf32>
    %36 = arith.addf %33, %35 : vector<16x32xf32>
    %cst_18 = arith.constant 0.000000e+00 : f32
    %37 = vector.broadcast %cst_18 : f32 to vector<16x32xf32>
    %38 = arith.maximumf %36, %37 : vector<16x32xf32>
    %39 = arith.addf %38, %31 : vector<16x32xf32>
    %40 = vector.shape_cast %39 : vector<16x32xf32> to vector<4x4x32xf32>
    %c0_19 = arith.constant 0 : index
    %c0_20 = arith.constant 0 : index
    %c0_21 = arith.constant 0 : index
    %41 = vector.load %arg8[%c0_19, %c0_20, %c0_21] : memref<4x4x32xf32, #tpu.memory_space<vmem>>, vector<4x4x32xf32>
    tpu.vector_store %arg8[%c0_19, %c0_20, %c0_21], %40 {strides = array<i32>} : memref<4x4x32xf32, #tpu.memory_space<vmem>>, vector<4x4x32xf32>,
    return
  }
  func.func @transform_0(%arg0: i32, %arg1: i32) -> (i32, i32) {
    %c0_i32 = arith.constant 0 : i32
    %c0_i32_0 = arith.constant 0 : i32
    %c0_i32_1 = arith.constant 0 : i32
    return %c0_i32, %c0_i32_0 : i32, i32
  }
  func.func @transform_1(%arg0: i32, %arg1: i32) -> (i32, i32) {
    %c0_i32 = arith.constant 0 : i32
    %c0_i32_0 = arith.constant 0 : i32
    %c0_i32_1 = arith.constant 0 : i32
    return %c0_i32, %c0_i32_0 : i32, i32
  }
  func.func @transform_2(%arg0: i32, %arg1: i32) -> (i32, i32, i32) {
    %c0_i32 = arith.constant 0 : i32
    %c0_i32_0 = arith.constant 0 : i32
    return %arg0, %arg1, %c0_i32 : i32, i32, i32
  }
  func.func @transform_3(%arg0: i32, %arg1: i32) -> (i32, i32) {
    %c0_i32 = arith.constant 0 : i32
    %c0_i32_0 = arith.constant 0 : i32
    %c0_i32_1 = arith.constant 0 : i32
    return %c0_i32, %c0_i32_0 : i32, i32
  }
  func.func @transform_4(%arg0: i32, %arg1: i32) -> (i32, i32) {
    %c0_i32 = arith.constant 0 : i32
    %c0_i32_0 = arith.constant 0 : i32
    %c0_i32_1 = arith.constant 0 : i32
    return %c0_i32, %c0_i32_0 : i32, i32
  }
  func.func @transform_5(%arg0: i32, %arg1: i32) -> (i32, i32) {
    %c0_i32 = arith.constant 0 : i32
    %c0_i32_0 = arith.constant 0 : i32
    %c0_i32_1 = arith.constant 0 : i32
    return %c0_i32, %c0_i32_0 : i32, i32
  }
  func.func @transform_6(%arg0: i32, %arg1: i32) -> (i32, i32, i32) {
    %c0_i32 = arith.constant 0 : i32
    %c0_i32_0 = arith.constant 0 : i32
    %c0_i32_1 = arith.constant 0 : i32
    return %arg0, %c0_i32, %c0_i32_0 : i32, i32, i32
  }
}

</mosaic_0001>

<bundles_post_ra>
// kernel: tpu_custom_call.1
= control target key start
LH: loop header
LB: loop body
LE: loop exit
PB: predicated region body
PF: predicated region fallthrough
CT: control target
= control target key end

     0   :  { %11 = vsyncpa [#allocation3], 0  ;;  %s1602_s0 = inlined_call_operand.vmem [shape: f32[4,32], index: 0, kind: input, shape index: {}]   ;;  %s1603_s1 = inlined_call_operand.vmem [shape: f32[32,16], index: 1, kind: input, shape index: {}]   ;;  %s1604_s2 = inlined_call_operand.hbm [shape: f32[4,16,32], index: 2, kind: input, shape index: {}]   ;;  %s1605_s3 = inlined_call_operand.vmem [shape: f32[32,64], index: 3, kind: input, shape index: {}]   ;;  %s1606_s4 = inlined_call_operand.hbm [shape: f32[32,32], index: 4, kind: input, shape index: {}]   ;;  %s1607_s5 = inlined_call_operand.vmem [shape: f32[1,32], index: 5, kind: input, shape index: {}]   ;;  %s1608_s6 = inlined_call_operand.hbm [shape: f32[4,4,32], index: 6, kind: output, shape index: {}]  }
   0x1   :  { %12 = vsyncpa [#allocation6], 0 }
   0x2   :  { %13 = vsyncpa [#allocation4], 0  ;;  %s1435_s21 = smov [#allocation2]   ;;  %s1363_s25 = scalar_lea.hbm %s1604_s2, 1024 }
   0x3   :  { %s23_s22 = sshll.u32 %s1435_s21, 4  ;;  %p1364_p0 = scmp.ne.s32.totalorder %s1604_s2, %s1363_s25  ;;  %s24_s22 = int_to_ptr.vmem [resolvable:$true] %s23_s22 }
   0x4   :  { %p1367_p1 = scmp.lt.u32.totalorder %s1363_s25, %s1604_s2 }
   0x6   :  { %p1369_p2 = pnand %p1367_p1, %p1364_p0 }
   0x8   :  { %1372 = shalt.err (!%p1369_p2)
}
   0x9   :  { %s1373_s30 = scalar_lea.vmem %s24_s22, 1024  ;;  %p1378_p4 = scmp.lt.s32.totalorder %s24_s22, %s24_s22 }
   0xa   :  { %p1374_p3 = scmp.ne.s32.totalorder %s24_s22, %s1373_s30  ;;  %p1379_p5 = scmp.lt.s32.totalorder %s1373_s30, %s1373_s30 }
   0xc   :  { %p1380_p6 = por %p1379_p5, %p1378_p4 }
   0xe   :  { %p1381_p7 = pnand %p1380_p6, %p1374_p3 }
  0x10   :  { %1384 = shalt.err (!%p1381_p7)
}
  0x11   :  { %s1436_s7 = smov 128   ;;  %s1437_s8 = smov 8  }
  0x12   :  { %29 = dma.hbm_to_vmem [thread:$0]  %s1604_s2, 1024, %s24_s22, [#allocation3], %s1436_s7, %s1436_s7, %s1437_s8  }
  0x13   :  { %s1438_s11 = smov [#allocation5]   ;;  %s1385_s15 = scalar_lea.hbm %s1606_s4, 512 }
  0x14   :  { %s37_s12 = sshll.u32 %s1438_s11, 4  ;;  %p1386_p8 = scmp.ne.s32.totalorder %s1606_s4, %s1385_s15  ;;  %s38_s12 = int_to_ptr.vmem [resolvable:$true] %s37_s12 }
  0x15   :  { %p1389_p9 = scmp.lt.u32.totalorder %s1385_s15, %s1606_s4 }
  0x17   :  { %p1391_p10 = pnand %p1389_p9, %p1386_p8 }
  0x19   :  { %1394 = shalt.err (!%p1391_p10)
}
  0x1a   :  { %s1395_s20 = scalar_lea.vmem %s38_s12, 512  ;;  %p1400_p12 = scmp.lt.s32.totalorder %s38_s12, %s38_s12 }
  0x1b   :  { %p1396_p11 = scmp.ne.s32.totalorder %s38_s12, %s1395_s20  ;;  %p1401_p13 = scmp.lt.s32.totalorder %s1395_s20, %s1395_s20 }
  0x1d   :  { %p1402_p0 = por %p1401_p13, %p1400_p12 }
  0x1f   :  { %p1403_p1 = pnand %p1402_p0, %p1396_p11 }
  0x21   :  { %1406 = shalt.err (!%p1403_p1)
}
  0x22   :  { %43 = dma.hbm_to_vmem [thread:$0]  %s1606_s4, 512, %s38_s12, [#allocation6], %s1436_s7, %s1436_s7, %s1437_s8  }
  0x23   :  { %1429 = dma.done.wait [#allocation3], 1024  }
  0x24   :  { %1430 = vsyncadd [#allocation3], 4294966272 }
  0x25   :  { %1431 = dma.done.wait [#allocation6], 512  }
  0x26   :  { %1432 = vsyncadd [#allocation6], 4294966784  ;;  %vm64_vm0 = vcmask 261120   ;;  %v60_v0 = vld [vmem:[%s1605_s3] sm:$0xff]  ;;  %v61_v1 = vld [vmem:[%s1605_s3 + $0x8] sm:$0xff]  ;;  %vm327_vm1 = vcmask 130048  }
  0x27   :  { %v62_v2 = vld [vmem:[%s1605_s3 + $0x10] sm:$0xff]  ;;  %v1270_v3 = vpack.c.bf16 %v61_v1, %v60_v0  ;;  %v63_v4 = vld [vmem:[%s1605_s3 + $0x18] sm:$0xff]  ;;  %v52_v5 = vld [vmem:[#allocation2] sm:$0xff]  ;;  %vm969_vm2 = vcmask 64512   ;;  %vm978_vm3 = vcmask 195584   ;;  %vm1095_vm4 = vcmask 257024  }
  0x28   :  { %v1274_v6 = vpack.c.bf16 %v63_v4, %v62_v2  ;;  %1199 = vmatprep.mubr.msk.f32.mxu0 %vm64_vm0, %v52_v5  ;;  %v194_v7 = vld [vmem:[%s1603_s1] sm:$0xff]  ;;  %v195_v8 = vld [vmem:[%s1603_s1 + $0x8] sm:$0xff]  ;;  %v196_v9 = vld [vmem:[%s1603_s1 + $0x10] sm:$0xff]  ;;  %s1440_s15 = smov [#allocation7]  }
  0x29   :  { %1271 = vmatprep.subr.bf16.mxu0 %v1270_v3  ;;  %v1278_v10 = vpack.c.bf16 %v195_v8, %v194_v7  ;;  %v197_v11 = vld [vmem:[%s1603_s1 + $0x18] sm:$0xff]  ;;  %v53_v13 = vld [vmem:[#allocation2 + $0x8] sm:$0xff]  ;;  %v54_v14 = vld [vmem:[#allocation2 + $0x10] sm:$0xff]  ;;  %s1439_s1 = smov 96   ;;  %s1105_s16 = sshll.u32 %s1440_s15, 4  ;;  %s1106_s16 = int_to_ptr.vmem [resolvable:$true] %s1105_s16 }
  0x2a   :  { %1273 = vmatpush3.bf16.msra.mxu0 %v1270_v3  ;;  %v1282_v12 = vpack.c.bf16 %v197_v11, %v196_v9  ;;  %v55_v15 = vld [vmem:[#allocation2 + $0x18] sm:$0xff]  ;;  %v56_v16 = vld [vmem:[#allocation2 + $0x20] sm:$0xff]  ;;  %v57_v17 = vld [vmem:[#allocation2 + $0x28] sm:$0xff]  ;;  %s1407_s17 = scalar_lea.vmem %s1106_s16, 256  ;;  %p1412_p3 = scmp.lt.s32.totalorder %s1106_s16, %s1106_s16 }
  0x2b   :  { %1275 = vmatprep.subr.bf16.mxu0 %v1274_v6  ;;  %1279 = vmatprep.subr.bf16.mxu1 %v1278_v10  ;;  %v58_v18 = vld [vmem:[#allocation2 + $0x30] sm:$0xff]  ;;  %v59_v19 = vld [vmem:[#allocation2 + $0x38] sm:$0xff]  ;;  %p1408_p2 = scmp.ne.s32.totalorder %s1106_s16, %s1407_s17  ;;  %p1413_p4 = scmp.lt.s32.totalorder %s1407_s17, %s1407_s17 }
  0x2c   :  { %1281 = vmatpush3.bf16.msra.mxu1 %v1278_v10 }
  0x2d   :  { %1283 = vmatprep.subr.bf16.mxu1 %v1282_v12  ;;  %p1414_p5 = por %p1413_p4, %p1412_p3 }
  0x2e   :  { %1277 = vmatpush3.bf16.msra.mxu0 %v1274_v6 }
  0x2f   :  { %p1415_p6 = pnand %p1414_p5, %p1408_p2 }
  0x30   :  { %1285 = vmatpush3.bf16.msra.mxu1 %v1282_v12 }
  0x31   :  { %1200 = vmatmul.mubr.msk.f32.vlgmr.msra.gmra.mrb[0].mxu0 %vm64_vm0, %v53_v13 }
  0x32   :  { %1202 = vmatprep.mubr.msk.f32.mxu0 %vm64_vm0, %v54_v14 }
  0x35   :  { %1203 = vmatmul.mubr.msk.f32.gmra.mrb[2].mxu0 %vm64_vm0, %v55_v15 }
  0x36   :  { %1205 = vmatprep.mubr.msk.f32.mxu0 %vm64_vm0, %v56_v16 }
  0x39   :  { %1206 = vmatmul.mubr.msk.f32.gmra.mrb[4].mxu0 %vm64_vm0, %v57_v17 }
  0x3a   :  { %1208 = vmatprep.mubr.msk.f32.mxu0 %vm64_vm0, %v58_v18 }
  0x3d   :  { %1209 = vmatmul.mubr.msk.f32.gmra.mrb[6].mxu0 %vm64_vm0, %v59_v19 }
 0x104   :  { %v1201_v20 = vpop.f32.mrb[0].mxu0 }
 0x105   :  { %v155_v21 = vpop.f32.mrb[1].mxu0 }
 0x106   :  { %1219 = vmatprep.mubr.msk.f32.mxu1 %vm64_vm0, %v155_v21  ;;  %v1319_v22 = vpack.i.bf16 %v1201_v20, %v155_v21 }
 0x107   :  { %1220 = vmatmul.mubr.msk.f32.vlgmr.msra.gmra.mrb[0].mxu1 %vm64_vm0, %v1201_v20 }
 0x108   :  { %1320 = vrot.lane.b32.xlu0 %v1319_v22, %s1439_s1  ;;  %v1204_v23 = vpop.f32.mrb[2].mxu0 }
 0x109   :  { %v165_v24 = vpop.f32.mrb[3].mxu0 }
 0x10a   :  { %v1324_v25 = vpack.i.bf16 %v1204_v23, %v165_v24  ;;  %1222 = vmatprep.mubr.msk.f32.mxu1 %vm64_vm0, %v165_v24 }
 0x10b   :  { %1223 = vmatmul.mubr.msk.f32.gmra.mrb[2].mxu1 %vm64_vm0, %v1204_v23 }
 0x10c   :  { %1325 = vrot.lane.b32.xlu0 %v1324_v25, %s1439_s1  ;;  %v1207_v26 = vpop.f32.mrb[4].mxu0 }
 0x10d   :  { %v175_v27 = vpop.f32.mrb[5].mxu0 }
 0x10e   :  { %1225 = vmatprep.mubr.msk.f32.mxu1 %vm64_vm0, %v175_v27  ;;  %v1329_v28 = vpack.i.bf16 %v1207_v26, %v175_v27 }
 0x10f   :  { %1226 = vmatmul.mubr.msk.f32.gmra.mrb[4].mxu1 %vm64_vm0, %v1207_v26 }
 0x110   :  { %1330 = vrot.lane.b32.xlu1 %v1329_v28, %s1439_s1  ;;  %v1210_v29 = vpop.f32.mrb[6].mxu0 }
 0x111   :  { %v185_v30 = vpop.f32.mrb[7].mxu0 }
 0x112   :  { %v1334_v31 = vpack.i.bf16 %v1210_v29, %v185_v30  ;;  %1228 = vmatprep.mubr.msk.f32.mxu1 %vm64_vm0, %v185_v30 }
 0x113   :  { %1229 = vmatmul.mubr.msk.f32.gmra.mrb[6].mxu1 %vm64_vm0, %v1210_v29 }
 0x114   :  { %1335 = vrot.lane.b32.xlu1 %v1334_v31, %s1439_s1 }
 0x17a   :  { %v1321_v32 = vpop.permute.xlu0 %1320 }
 0x17b   :  { %v1323_v33 = vunpack.i.h.bf16 %v1321_v32  ;;  %v1322_v34 = vunpack.i.l.bf16 %v1321_v32 }
 0x17d   :  { %v1286_v35 = vpack.c.bf16 %v1323_v33, %v1322_v34 }
 0x17e   :  { %v1326_v36 = vpop.permute.xlu0 %1325 }
 0x17f   :  { %v1328_v37 = vunpack.i.h.bf16 %v1326_v36  ;;  %v1327_v38 = vunpack.i.l.bf16 %v1326_v36  ;;  %1287 = vmatprep.subr.bf16.mxu1 %v1286_v35 }
 0x180   :  { %1289 = vmatpush3.bf16.msra.mxu1 %v1286_v35 }
 0x181   :  { %v1542_v39 = vpack.c.bf16 %v1328_v37, %v1327_v38 }
 0x182   :  { %v1331_v40 = vpop.permute.xlu1 %1330 }
 0x183   :  { %v1333_v41 = vunpack.i.h.bf16 %v1331_v40  ;;  %v1332_v42 = vunpack.i.l.bf16 %v1331_v40  ;;  %1291 = vmatprep.subr.bf16.mxu1 %v1542_v39 }
 0x185   :  { %v1294_v43 = vpack.c.bf16 %v1333_v41, %v1332_v42 }
 0x187   :  { %1295 = vmatprep.subr.bf16.mxu0 %v1294_v43 }
 0x188   :  { %1297 = vmatpush3.bf16.msra.mxu0 %v1294_v43 }
 0x1da   :  { %v1221_v44 = vpop.f32.mrb[0].mxu1 }
 0x1db   :  { %v329_v45 = vsel %vm327_vm1, %v1221_v44, -inf  ;;  %v288_v46 = vpop.f32.mrb[1].mxu1 }
 0x1dc   :  { %v328_v47 = vsel %vm327_vm1, %v288_v46, -inf }
 0x1dd   :  { %v330_v48 = vmax.f32 %v328_v47, %v329_v45 }
 0x1de   :  { %v1224_v49 = vpop.f32.mrb[2].mxu1 }
 0x1df   :  { %v331_v50 = vrot.slane %v330_v48, 4  ;;  %v338_v51 = vsel %vm327_vm1, %v1224_v49, -inf  ;;  %v298_v52 = vpop.f32.mrb[3].mxu1 }
 0x1e0   :  { %v337_v53 = vsel %vm327_vm1, %v298_v52, -inf }
 0x1e1   :  { %v332_v54 = vmax.f32 %v330_v48, %v331_v50  ;;  %v339_v55 = vmax.f32 %v337_v53, %v338_v51 }
 0x1e2   :  { %v1227_v56 = vpop.f32.mrb[4].mxu1 }
 0x1e3   :  { %v333_v57 = vrot.slane %v332_v54, 2  ;;  %v340_v58 = vrot.slane %v339_v55, 4  ;;  %v347_v59 = vsel %vm327_vm1, %v1227_v56, -inf  ;;  %v308_v60 = vpop.f32.mrb[5].mxu1 }
 0x1e4   :  { %v346_v61 = vsel %vm327_vm1, %v308_v60, -inf }
 0x1e5   :  { %v334_v62 = vmax.f32 %v332_v54, %v333_v57  ;;  %v341_v63 = vmax.f32 %v339_v55, %v340_v58  ;;  %v348_v0 = vmax.f32 %v346_v61, %v347_v59 }
 0x1e6   :  { %v1230_v1 = vpop.f32.mrb[6].mxu1 }
 0x1e7   :  { %v335_v2 = vrot.slane %v334_v62, 1  ;;  %v342_v3 = vrot.slane %v341_v63, 2  ;;  %v349_v4 = vrot.slane %v348_v0, 4  ;;  %v356_v5 = vsel %vm327_vm1, %v1230_v1, -inf  ;;  %v318_v6 = vpop.f32.mrb[7].mxu1 }
 0x1e8   :  { %v355_v7 = vsel %vm327_vm1, %v318_v6, -inf }
 0x1e9   :  { %v336_v8 = vmax.f32 %v334_v62, %v335_v2  ;;  %v343_v9 = vmax.f32 %v341_v63, %v342_v3  ;;  %v350_v10 = vmax.f32 %v348_v0, %v349_v4  ;;  %v357_v11 = vmax.f32 %v355_v7, %v356_v5 }
 0x1eb   :  { %v364_v12 = vsub.f32 %v288_v46, %v336_v8  ;;  %v365_v13 = vsub.f32 %v1221_v44, %v336_v8  ;;  %v344_v14 = vrot.slane %v343_v9, 1  ;;  %v351_v15 = vrot.slane %v350_v10, 2 }
 0x1ec   :  { %v358_v16 = vrot.slane %v357_v11, 4 }
 0x1ed   :  { %v372_v17 = vmul.f32 1.442695, %v364_v12  ;;  %v374_v18 = vmul.f32 1.442695, %v365_v13  ;;  %v345_v19 = vmax.f32 %v343_v9, %v344_v14  ;;  %v352_v20 = vmax.f32 %v350_v10, %v351_v15 }
 0x1ee   :  { %v359_v21 = vmax.f32 %v357_v11, %v358_v16 }
 0x1ef   :  { %1339 = vpow2.f32 %v372_v17  ;;  %v366_v22 = vsub.f32 %v298_v52, %v345_v19  ;;  %v367_v23 = vsub.f32 %v1224_v49, %v345_v19  ;;  %v353_v24 = vrot.slane %v352_v20, 1 }
 0x1f0   :  { %1341 = vpow2.f32 %v374_v18  ;;  %v360_v25 = vrot.slane %v359_v21, 2 }
 0x1f1   :  { %v376_v26 = vmul.f32 1.442695, %v366_v22  ;;  %v378_v27 = vmul.f32 1.442695, %v367_v23  ;;  %v354_v28 = vmax.f32 %v352_v20, %v353_v24 }
 0x1f2   :  { %v361_v29 = vmax.f32 %v359_v21, %v360_v25  ;;  %v1336_v25 = vpop.permute.xlu1 %1335 }
 0x1f3   :  { %1343 = vpow2.f32 %v376_v26  ;;  %v368_v30 = vsub.f32 %v308_v60, %v354_v28  ;;  %v369_v31 = vsub.f32 %v1227_v56, %v354_v28  ;;  %v1337_v28 = vunpack.i.l.bf16 %v1336_v25 }
 0x1f4   :  { %1345 = vpow2.f32 %v378_v27  ;;  %v362_v32 = vrot.slane %v361_v29, 1  ;;  %v1338_v27 = vunpack.i.h.bf16 %v1336_v25 }
 0x1f5   :  { %v380_v33 = vmul.f32 1.442695, %v368_v30  ;;  %v382_v34 = vmul.f32 1.442695, %v369_v31 }
 0x1f6   :  { %v363_v35 = vmax.f32 %v361_v29, %v362_v32  ;;  %v1298_v31 = vpack.c.bf16 %v1338_v27, %v1337_v28 }
 0x1f7   :  { %1347 = vpow2.f32 %v380_v33 }
 0x1f8   :  { %1349 = vpow2.f32 %v382_v34  ;;  %v370_v36 = vsub.f32 %v318_v6, %v363_v35  ;;  %v371_v37 = vsub.f32 %v1230_v1, %v363_v35 }
 0x1f9   :  { %v1340_v38 = vpop.eup %1339 }
 0x1fa   :  { %v1342_v40 = vpop.eup %1341  ;;  %v864_v41 = vsel %vm327_vm1, %v1340_v38, 0.0  ;;  %v384_v42 = vmul.f32 1.442695, %v370_v36  ;;  %v386_v43 = vmul.f32 1.442695, %v371_v37  ;;  %388 = vxpose.xlu0.b32.start [1/2] (short) (narrow) %v1340_v38, 16 }
 0x1fb   :  { %v865_v44 = vsel %vm327_vm1, %v1342_v40, 0.0  ;;  %v988_v37 = vld [vmem:[#allocation5 + $0x8] sm:$0xff] }
 0x1fc   :  { %v866_v45 = vadd.f32 %v865_v44, %v864_v41  ;;  %1351 = vpow2.f32 %v384_v42  ;;  %v990_v41 = vld [vmem:[#allocation5 + $0x18] sm:$0xff] }
 0x1fd   :  { %v1344_v46 = vpop.eup %1343  ;;  %1353 = vpow2.f32 %v386_v43 }
 0x1fe   :  { %v1346_v47 = vpop.eup %1345  ;;  %v867_v48 = vrot.slane %v866_v45, 4  ;;  %v873_v49 = vsel %vm327_vm1, %v1344_v46, 0.0  ;;  %389 = vxpose.xlu0.b32.end [2/2] (short) (narrow) %v1342_v40, 16  ;;  %507 = vxpose.xlu1.b32.start [1/2] (short) (narrow) %v1344_v46, 16  ;;  %v989_v40 = vld [vmem:[#allocation5 + $0x10] sm:$0xff] }
 0x1ff   :  { %v874_v50 = vsel %vm327_vm1, %v1346_v47, 0.0  ;;  %v1306_v42 = vpack.c.bf16 %v990_v41, %v989_v40 }
 0x200   :  { %v875_v51 = vadd.f32 %v874_v50, %v873_v49  ;;  %v868_v53 = vadd.f32 %v867_v48, %v866_v45 }
 0x201   :  { %v1348_v52 = vpop.eup %1347 }
 0x202   :  { %v1350_v54 = vpop.eup %1349  ;;  %v882_v55 = vsel %vm327_vm1, %v1348_v52, 0.0  ;;  %626 = vxpose.xlu0.b32.start [1/2] (short) (narrow) %v1348_v52, 16  ;;  %508 = vxpose.xlu1.b32.end [2/2] (short) (narrow) %v1346_v47, 16  ;;  %v876_v58 = vrot.slane %v875_v51, 4  ;;  %v869_v59 = vrot.slane %v868_v53, 2 }
 0x203   :  { %v883_v56 = vsel %vm327_vm1, %v1350_v54, 0.0 }
 0x204   :  { %v884_v57 = vadd.f32 %v883_v56, %v882_v55  ;;  %v870_v2 = vadd.f32 %v869_v59, %v868_v53  ;;  %v877_v3 = vadd.f32 %v876_v58, %v875_v51 }
 0x206   :  { %v1352_v60 = vpop.eup %1351  ;;  %627 = vxpose.xlu0.b32.end [2/2] (short) (narrow) %v1350_v54, 16  ;;  %v885_v0 = vrot.slane %v884_v57, 4  ;;  %v871_v5 = vrot.slane %v870_v2, 1  ;;  %v878_v6 = vrot.slane %v877_v3, 2 }
 0x207   :  { %v1354_v61 = vpop.eup %1353  ;;  %v891_v62 = vsel %vm327_vm1, %v1352_v60, 0.0 }
 0x208   :  { %v892_v63 = vsel %vm327_vm1, %v1354_v61, 0.0  ;;  %v886_v7 = vadd.f32 %v885_v0, %v884_v57  ;;  %v872_v8 = vadd.f32 %v871_v5, %v870_v2  ;;  %v879_v9 = vadd.f32 %v878_v6, %v877_v3  ;;  %v944_v5 = vld [vmem:[%s1602_s0] sm:$0xf] }
 0x209   :  { %v893_v1 = vadd.f32 %v892_v63, %v891_v62 }
 0x20a   :  { %745 = vxpose.xlu0.b32.start [1/2] (short) (narrow) %v1352_v60, 16  ;;  %v887_v10 = vrot.slane %v886_v7, 2  ;;  %1355 = vrcp.f32 %v872_v8  ;;  %v880_v12 = vrot.slane %v879_v9, 1 }
 0x20b   :  { %v894_v4 = vrot.slane %v893_v1, 4 }
 0x20c   :  { %v888_v13 = vadd.f32 %v887_v10, %v886_v7  ;;  %v881_v15 = vadd.f32 %v880_v12, %v879_v9 }
 0x20d   :  { %v895_v11 = vadd.f32 %v894_v4, %v893_v1 }
 0x20e   :  { %746 = vxpose.xlu0.b32.end [2/2] (short) (narrow) %v1354_v61, 16  ;;  %v889_v16 = vrot.slane %v888_v13, 1  ;;  %1357 = vrcp.f32 %v881_v15 }
 0x20f   :  { %v896_v14 = vrot.slane %v895_v11, 2 }
 0x210   :  { %v890_v18 = vadd.f32 %v889_v16, %v888_v13 }
 0x211   :  { %v897_v17 = vadd.f32 %v896_v14, %v895_v11 }
 0x212   :  { %1359 = vrcp.f32 %v890_v18 }
 0x213   :  { %v898_v19 = vrot.slane %v897_v17, 1 }
 0x214   :  { %v1356_v20 = vpop.eup %1355 }
 0x215   :  { %v899_v21 = vadd.f32 %v898_v19, %v897_v17 }
 0x217   :  { %1361 = vrcp.f32 %v899_v21 }
 0x218   :  { %v1358_v22 = vpop.eup %1357 }
 0x21c   :  { %v1360_v23 = vpop.eup %1359 }
 0x220   :  { %909 = vbcast.lane.b32.xlu1 %v1356_v20, 256 }
 0x221   :  { %v1362_v24 = vpop.eup %1361 }
 0x224   :  { %913 = vbcast.lane.b32.xlu1 %v1356_v20, 264 }
 0x228   :  { %920 = vbcast.lane.b32.xlu1 %v1358_v22, 264 }
 0x22c   :  { %923 = vbcast.lane.b32.xlu1 %v1360_v23, 256 }
 0x230   :  { %930 = vbcast.lane.b32.xlu1 %v1362_v24, 256 }
 0x234   :  { %934 = vbcast.lane.b32.xlu1 %v1362_v24, 264 }
 0x237   :  { %916 = vbcast.lane.b32.xlu0 %v1358_v22, 256 }
 0x23b   :  { %927 = vbcast.lane.b32.xlu0 %v1360_v23, 264 }
 0x27a   :  { %v404_v26 = vpop.trf.xlu0 }
 0x27b   :  { %1235 = vmatprep.mubr.msk.f32.mxu1 %vm327_vm1, %v404_v26 }
 0x27e   :  { %v405_v29 = vpop.trf.xlu0  ;;  %v523_v30 = vpop.trf.xlu1 }
 0x27f   :  { %1236 = vmatmul.mubr.msk.f32.vlgmr.msra.gmra.mrb[8].mxu1 %vm327_vm1, %v405_v29 }
 0x280   :  { %1293 = vmatpush3.bf16.msra.mxu1 %v1542_v39  ;;  %1242 = vmatprep.mubr.msk.f32.mxu1 %vm327_vm1, %v523_v30  ;;  %v987_v39 = vld [vmem:[#allocation5] sm:$0xff] }
 0x281   :  { %1299 = vmatprep.subr.bf16.mxu1 %v1298_v31  ;;  %v1302_v38 = vpack.c.bf16 %v988_v37, %v987_v39  ;;  %v1142_v30 = vld [vmem:[%s1607_s5] ss:$0 sm:$0xff] }
 0x282   :  { %v642_v32 = vpop.trf.xlu0  ;;  %v524_v33 = vpop.trf.xlu1 }
 0x283   :  { %1243 = vmatmul.mubr.msk.f32.vlgmr.msra.gmra.mrb[10].mxu1 %vm327_vm1, %v524_v33  ;;  %1249 = vmatprep.mubr.msk.f32.mxu0 %vm327_vm1, %v642_v32 }
 0x284   :  { %1301 = vmatpush3.bf16.msra.mxu1 %v1298_v31  ;;  %1303 = vmatprep.subr.bf16.mxu0 %v1302_v38 }
 0x286   :  { %v643_v34 = vpop.trf.xlu0 }
 0x287   :  { %1250 = vmatmul.mubr.msk.f32.vlgmr.msra.gmra.mrb[8].mxu0 %vm327_vm1, %v643_v34 }
 0x288   :  { %1305 = vmatpush3.bf16.msra.mxu0 %v1302_v38 }
 0x289   :  { %1307 = vmatprep.subr.bf16.mxu0 %v1306_v42 }
 0x28a   :  { %v761_v35 = vpop.trf.xlu0 }
 0x28b   :  { %1256 = vmatprep.mubr.msk.f32.mxu1 %vm327_vm1, %v761_v35 }
 0x28c   :  { %1309 = vmatpush3.bf16.msra.mxu0 %v1306_v42 }
 0x28e   :  { %v762_v36 = vpop.trf.xlu0 }
 0x28f   :  { %1257 = vmatmul.mubr.msk.f32.vlgmr.msra.gmra.mrb[12].mxu1 %vm327_vm1, %v762_v36 }
 0x292   :  { %v910_v43 = vpop.permute.xlu1 %909 }
 0x296   :  { %v914_v44 = vpop.permute.xlu1 %913 }
 0x29a   :  { %v921_v45 = vpop.permute.xlu1 %920 }
 0x29e   :  { %v924_v53 = vpop.permute.xlu1 %923 }
 0x2a2   :  { %v931_v6 = vpop.permute.xlu1 %930 }
 0x2a6   :  { %v935_v18 = vpop.permute.xlu1 %934 }
 0x2a9   :  { %v917_v50 = vpop.permute.xlu0 %916 }
 0x2ad   :  { %v928_v63 = vpop.permute.xlu0 %927 }
 0x352   :  { %v1237_v46 = vpop.f32.mrb[8].mxu1 }
 0x353   :  { %v498_v47 = vpop.f32.mrb[9].mxu1  ;;  %v937_v48 = vmul.f32 %v1237_v46, %v914_v44 }
 0x354   :  { %v936_v49 = vmul.f32 %v910_v43, %v498_v47 }
 0x355   :  { %v961_v55 = vrot.slane %v937_v48, 4 }
 0x356   :  { %v949_v51 = vrot.slane %v936_v49, 4  ;;  %v1244_v52 = vpop.f32.mrb[10].mxu1 }
 0x357   :  { %v617_v54 = vpop.f32.mrb[11].mxu1  ;;  %v939_v57 = vmul.f32 %v1244_v52, %v921_v45 }
 0x358   :  { %v970_v56 = vsel %vm969_vm2, %v936_v49, %v949_v51  ;;  %v938_v58 = vmul.f32 %v917_v50, %v617_v54 }
 0x359   :  { %v974_v59 = vsel %vm327_vm1, %v970_v56, %v937_v48  ;;  %v962_v1 = vrot.slane %v939_v57, 4 }
 0x35a   :  { %v979_v60 = vsel %vm978_vm3, %v974_v59, %v961_v55  ;;  %v950_v61 = vrot.slane %v938_v58, 4  ;;  %v1251_v62 = vpop.f32.mrb[8].mxu0 }
 0x35b   :  { %v736_v0 = vpop.f32.mrb[9].mxu0  ;;  %v941_v3 = vmul.f32 %v1251_v62, %v928_v63  ;;  %v983_v10 = vadd.f32 %v979_v60, %v944_v5 }
 0x35c   :  { %v971_v2 = vsel %vm969_vm2, %v938_v58, %v950_v61  ;;  %v940_v4 = vmul.f32 %v924_v53, %v736_v0 }
 0x35d   :  { %v975_v7 = vsel %vm327_vm1, %v971_v2, %v939_v57  ;;  %v963_v12 = vrot.slane %v941_v3, 4 }
 0x35e   :  { %v980_v8 = vsel %vm978_vm3, %v975_v7, %v962_v1  ;;  %v951_v9 = vrot.slane %v940_v4, 4 }
 0x35f   :  { %v984_v11 = vadd.f32 %v980_v8, %v944_v5 }
 0x360   :  { %v972_v13 = vsel %vm969_vm2, %v940_v4, %v951_v9 }
 0x361   :  { %v976_v14 = vsel %vm327_vm1, %v972_v13, %v941_v3  ;;  %v1002_v15 = vcombine.low %v983_v10, %v984_v11 }
 0x362   :  { %v981_v16 = vsel %vm978_vm3, %v976_v14, %v963_v12  ;;  %v1258_v17 = vpop.f32.mrb[12].mxu1 }
 0x363   :  { %v855_v19 = vpop.f32.mrb[13].mxu1  ;;  %1267 = vmatprep.mubr.msk.f32.mxu0 %vm64_vm0, %v1002_v15  ;;  %v943_v20 = vmul.f32 %v1258_v17, %v935_v18  ;;  %v985_v27 = vadd.f32 %v981_v16, %v944_v5 }
 0x364   :  { %v942_v21 = vmul.f32 %v931_v6, %v855_v19 }
 0x365   :  { %v964_v23 = vrot.slane %v943_v20, 4 }
 0x366   :  { %v952_v22 = vrot.slane %v942_v21, 4 }
 0x368   :  { %v973_v24 = vsel %vm969_vm2, %v942_v21, %v952_v22 }
 0x369   :  { %v977_v25 = vsel %vm327_vm1, %v973_v24, %v943_v20 }
 0x36a   :  { %v982_v26 = vsel %vm978_vm3, %v977_v25, %v964_v23 }
 0x36b   :  { %v986_v28 = vadd.f32 %v982_v26, %v944_v5 }
 0x36d   :  { %v1003_v29 = vcombine.low %v985_v27, %v986_v28 }
 0x36f   :  { %1268 = vmatmul.mubr.msk.f32.vlgmr.msra.gmra.mrb[10].mxu0 %vm64_vm0, %v1003_v29 }
 0x442   :  { %v1269_v31 = vpop.f32.mrb[10].mxu0 }
 0x443   :  { %v1080_v32 = vadd.f32 %v1269_v31, %v1142_v30  ;;  %v1074_v33 = vpop.f32.mrb[11].mxu0 }
 0x444   :  { %v1075_v34 = vadd.f32 %v1142_v30, %v1074_v33 }
 0x445   :  { %v1084_v35 = vmax.f32 %v1080_v32, 0.0 }
 0x446   :  { %v1083_v36 = vmax.f32 %v1075_v34, 0.0 }
 0x447   :  { %v1088_v39 = vadd.f32 %v1084_v35, %v1003_v29 }
 0x448   :  { %v1087_v37 = vadd.f32 %v1083_v36, %v1002_v15 }
 0x449   :  { %v1092_v38 = vcombine.high %v1088_v39, %v1088_v39  ;;  %1098 = vst.msk [vmem:[#allocation7 + $0x8] sm:$0xf] %vm1095_vm4, %v1088_v39 }
 0x44a   :  { %v1091_v40 = vcombine.high %v1087_v37, %v1087_v37  ;;  %1096 = vst.msk [vmem:[#allocation7] sm:$0xf] %vm1095_vm4, %v1087_v37 }
 0x44b   :  { %1099 = vst.msk [vmem:[#allocation7 + $0xc] sm:$0xf] %vm1095_vm4, %v1092_v38 }
 0x44c   :  { %1097 = vst.msk [vmem:[#allocation7 + $0x4] sm:$0xf] %vm1095_vm4, %v1091_v40 }
 0x44d   :  { %1418 = shalt.err (!%p1415_p6)
}
 0x44e   :  { %s1419_s19 = scalar_lea.hbm %s1608_s6, 256 }
 0x44f   :  { %p1420_p7 = scmp.ne.s32.totalorder %s1608_s6, %s1419_s19  ;;  %p1423_p8 = scmp.lt.u32.totalorder %s1419_s19, %s1608_s6 }
 0x451   :  { %p1425_p9 = pnand %p1423_p8, %p1420_p7 }
 0x453   :  { %1428 = shalt.err (!%p1425_p9)
}
 0x454   :  { %s1441_s23 = smov 64   ;;  %s1442_s24 = smov 4  }
 0x455   :  { %1111 = dma.vmem_to_hbm [thread:$0]  %s1106_s16, 256, %s1608_s6, [#allocation4], %s1441_s23, %s1441_s23, %s1442_s24  }
 0x456   :  { %1433 = dma.done.wait [#allocation4], 256  }
 0x457   :  { %1434 = vsyncadd [#allocation4], 4294967040 }
 0x458   :  { %1115 = vsyncpa [#allocation3], 1 }
 0x459   :  { %1116 = vsyncpa [#allocation6], 1 }
 0x45a   :  { %1117 = vsyncpa [#allocation4], 1 }

</bundles_post_ra>
